<compile_context>
chip_gen: v7x
topology: tpu7x:2x2x1
jax: 0.10.0
libtpu: 0.0.40
codegen_flags: <defaults>
</compile_context>

<pallas_src>
import functools

import jax
import jax.numpy as jnp
from jax.experimental import pallas as pl
from jax.experimental.pallas import tpu as pltpu


def _round_up(x, m):
    return ((x + m - 1) // m) * m


def _linear_logsoftmax_kernel(x_ref, w_ref, b_ref, o_ref):
    # MXU matmul (f32 accumulation) + bias + numerically-stable log_softmax
    # (VPU/EUP/XLU), fused over one VMEM-resident batch tile.
    logits = jnp.dot(x_ref[...], w_ref[...], preferred_element_type=jnp.float32)
    logits = logits + b_ref[...]                       # (TB, Op) + (1, Op)
    m = jnp.max(logits, axis=-1, keepdims=True)        # padded cols hold -1e30
    shifted = logits - m
    lse = jnp.log(jnp.sum(jnp.exp(shifted), axis=-1, keepdims=True))
    o_ref[...] = (shifted - lse).astype(o_ref.dtype)


@functools.partial(jax.jit, static_argnames=("tb", "use_bf16"))
def linear_classifier_forward(x, w, b, *, tb=256, use_bf16=False):
    """Forward pass of LinearClassifier.

    x: (B, In) f32
    w: (Out, In) f32  (PyTorch nn.Linear weight layout)
    b: (Out,)   f32
    returns: (B, Out) f32 log-probabilities.
    """
    B, In = x.shape
    Out = w.shape[0]

    # Lane-dense class dimension: pad Out up to a multiple of 128.
    Out_p = max(128, _round_up(Out, 128))
    # Batch tile: multiple of 8 sublanes, capped at `tb`; pad B to whole tiles.
    TB = min(_round_up(tb, 8), _round_up(B, 8))
    B_p = _round_up(B, TB)
    n_tiles = B_p // TB

    # Prepare padded operands (layout plumbing outside the kernel).
    x_p = x if B_p == B else jnp.pad(x, ((0, B_p - B), (0, 0)))
    w_t = jnp.zeros((In, Out_p), jnp.float32).at[:, :Out].set(w.T)
    # Padded bias = -1e30 so padded columns never affect max / logsumexp.
    b_p = jnp.full((1, Out_p), -1e30, jnp.float32).at[0, :Out].set(b)

    mm_dtype = jnp.bfloat16 if use_bf16 else jnp.float32
    x_p = x_p.astype(mm_dtype)
    w_t = w_t.astype(mm_dtype)

    # VMEM budget: double-buffered x & out tiles + resident weight + bias,
    # with 2x headroom, clamped to [16 MiB, 64 MiB] (safe on v5e..v7x).
    elt = 2 if use_bf16 else 4
    est = (2 * TB * In * elt) + (In * Out_p * elt) + (Out_p * 4) + (2 * TB * Out_p * 4)
    vmem_limit = int(min(max(2 * est, 16 * 1024 * 1024), 64 * 1024 * 1024))

    out = pl.pallas_call(
        _linear_logsoftmax_kernel,
        out_shape=jax.ShapeDtypeStruct((B_p, Out_p), jnp.float32),
        grid_spec=pltpu.PrefetchScalarGridSpec(
            num_scalar_prefetch=0,
            grid=(n_tiles,),
            in_specs=[
                pl.BlockSpec((TB, In), lambda i: (i, 0)),     # streamed x tiles
                pl.BlockSpec((In, Out_p), lambda i: (0, 0)),  # resident weight
                pl.BlockSpec((1, Out_p), lambda i: (0, 0)),   # resident bias
            ],
            out_specs=pl.BlockSpec((TB, Out_p), lambda i: (i, 0)),
        ),
        compiler_params=pltpu.CompilerParams(
            dimension_semantics=("parallel",),
            vmem_limit_bytes=vmem_limit,
        ),
    )(x_p, w_t, b_p)

    # Drop batch / class padding.
    return out[:B, :Out]


def init_linear_params(key, input_size, output_size):
    # Matches nn.Linear default init: U(-1/sqrt(in), 1/sqrt(in)) for W and b.
    kw, kb = jax.random.split(key)
    bound = 1.0 / (input_size ** 0.5)
    w = jax.random.uniform(kw, (output_size, input_size), jnp.float32, -bound, bound)
    b = jax.random.uniform(kb, (output_size,), jnp.float32, -bound, bound)
    return w, b


if __name__ == "__main__":
    key = jax.random.PRNGKey(0)
    kx, kp, kx2, kp2 = jax.random.split(key, 4)

    # Primary small-shape check (matches the module's toy usage).
    batch, input_size, output_size = 8, 32, 16
    x = jax.random.normal(kx, (batch, input_size), jnp.float32)
    w, b = init_linear_params(kp, input_size, output_size)

    out = linear_classifier_forward(x, w, b)
    out = jax.block_until_ready(out)

    ref = jax.nn.log_softmax(x @ w.T + b, axis=-1)
    assert out.shape == (batch, output_size)
    assert jnp.allclose(out, ref, atol=1e-5, rtol=1e-5)

    # Second check exercising multiple batch tiles (grid > 1) + padding paths.
    batch2, in2, out2 = 300, 64, 10          # non-multiple batch, Out < 128
    x2 = jax.random.normal(kx2, (batch2, in2), jnp.float32)
    w2, b2 = init_linear_params(kp2, in2, out2)
    y2 = jax.block_until_ready(
        linear_classifier_forward(x2, w2, b2, tb=128))
    ref2 = jax.nn.log_softmax(x2 @ w2.T + b2, axis=-1)
    assert y2.shape == (batch2, out2)
    assert jnp.allclose(y2, ref2, atol=1e-5, rtol=1e-5)

    print("KERNEL_OK")
</pallas_src>

<mosaic_0001>
module attributes {stable_mosaic.version = 11 : i64} {
  func.func @_linear_logsoftmax_kernel(%arg0: i32, %arg1: memref<8x32xf32, #tpu.memory_space<vmem>>, %arg2: memref<32x128xf32, #tpu.memory_space<vmem>>, %arg3: memref<1x128xf32, #tpu.memory_space<vmem>>, %arg4: memref<8x128xf32, #tpu.memory_space<vmem>>) attributes {dimension_semantics = [#tpu.dimension_semantics<parallel>], iteration_bounds = array<i64: 1>, scalar_prefetch = 0 : i64, scratch_operands = 0 : i64, tpu.core_type = #tpu.core_type<tc>, window_params = [{transform_indices = @transform_0, window_bounds = array<i64: 8, 32>}, {pipeline_mode = #tpu.pipeline_mode<synchronous>, transform_indices = @transform_1, window_bounds = array<i64: 32, 128>}, {pipeline_mode = #tpu.pipeline_mode<synchronous>, transform_indices = @transform_2, window_bounds = array<i64: 1, 128>}, {transform_indices = @transform_3, window_bounds = array<i64: 8, 128>}]} {
    %c0 = arith.constant 0 : index
    %c0_0 = arith.constant 0 : index
    %0 = vector.load %arg1[%c0, %c0_0] : memref<8x32xf32, #tpu.memory_space<vmem>>, vector<8x32xf32>
    %c0_1 = arith.constant 0 : index
    %c0_2 = arith.constant 0 : index
    %1 = vector.load %arg2[%c0_1, %c0_2] : memref<32x128xf32, #tpu.memory_space<vmem>>, vector<32x128xf32>
    %cst = arith.constant dense<0.000000e+00> : vector<8x128xf32>
    %2 = tpu.matmul %0, %1, %cst {dimension_numbers = #tpu.dot_dimension_numbers<[1], [0], [0], [1], [0, 0, 1, 1], [], []>} : vector<8x32xf32>, vector<32x128xf32>, vector<8x128xf32> -> vector<8x128xf32>
    %c0_3 = arith.constant 0 : index
    %c0_4 = arith.constant 0 : index
    %3 = vector.load %arg3[%c0_3, %c0_4] : memref<1x128xf32, #tpu.memory_space<vmem>>, vector<1x128xf32>
    %4 = vector.broadcast %3 : vector<1x128xf32> to vector<8x128xf32>
    %5 = arith.addf %2, %4 : vector<8x128xf32>
    %cst_5 = arith.constant dense<0xFF800000> : vector<8xf32>
    %6 = vector.multi_reduction <maximumf>, %5, %cst_5 [1] : vector<8x128xf32> to vector<8xf32>
    %7 = vector.shape_cast %6 : vector<8xf32> to vector<8x1xf32>
    %8 = vector.broadcast %7 : vector<8x1xf32> to vector<8x128xf32>
    %9 = arith.subf %5, %8 : vector<8x128xf32>
    %10 = math.exp %9 : vector<8x128xf32>
    %cst_6 = arith.constant dense<0.000000e+00> : vector<8xf32>
    %11 = vector.multi_reduction <add>, %10, %cst_6 [1] : vector<8x128xf32> to vector<8xf32>
    %12 = vector.shape_cast %11 : vector<8xf32> to vector<8x1xf32>
    %13 = math.log %12 : vector<8x1xf32>
    %14 = vector.broadcast %13 : vector<8x1xf32> to vector<8x128xf32>
    %15 = arith.subf %9, %14 : vector<8x128xf32>
    %c0_7 = arith.constant 0 : index
    %c0_8 = arith.constant 0 : index
    %16 = vector.load %arg4[%c0_7, %c0_8] : memref<8x128xf32, #tpu.memory_space<vmem>>, vector<8x128xf32>
    tpu.vector_store %arg4[%c0_7, %c0_8], %15 {strides = array<i32>} : memref<8x128xf32, #tpu.memory_space<vmem>>, vector<8x128xf32>,
    return
  }
  func.func @transform_0(%arg0: i32) -> (i32, i32) {
    %c0_i32 = arith.constant 0 : i32
    %c0_i32_0 = arith.constant 0 : i32
    return %arg0, %c0_i32 : i32, i32
  }
  func.func @transform_1(%arg0: i32) -> (i32, i32) {
    %c0_i32 = arith.constant 0 : i32
    %c0_i32_0 = arith.constant 0 : i32
    %c0_i32_1 = arith.constant 0 : i32
    return %c0_i32, %c0_i32_0 : i32, i32
  }
  func.func @transform_2(%arg0: i32) -> (i32, i32) {
    %c0_i32 = arith.constant 0 : i32
    %c0_i32_0 = arith.constant 0 : i32
    %c0_i32_1 = arith.constant 0 : i32
    return %c0_i32, %c0_i32_0 : i32, i32
  }
  func.func @transform_3(%arg0: i32) -> (i32, i32) {
    %c0_i32 = arith.constant 0 : i32
    %c0_i32_0 = arith.constant 0 : i32
    return %arg0, %c0_i32 : i32, i32
  }
}

</mosaic_0001>

<bundles_post_ra>
// kernel: linear_classifier_forward.1
= control target key start
LH: loop header
LB: loop body
LE: loop exit
PB: predicated region body
PF: predicated region fallthrough
CT: control target
= control target key end

     0   :  { %v182_v3 = vmov 0.0|0.0   ;;  %vm183_vm0 = vmmov 0   ;;  %v184_v6 = vmov 0.0   ;;  %s236_s0 = inlined_call_operand.vmem [shape: f32[8,32], index: 0, kind: input, shape index: {}]   ;;  %s237_s1 = inlined_call_operand.vmem [shape: f32[32,128], index: 1, kind: input, shape index: {}]   ;;  %s238_s2 = inlined_call_operand.vmem [shape: f32[1,128], index: 2, kind: input, shape index: {}]   ;;  %s239_s3 = inlined_call_operand.hbm [shape: f32[8,128], index: 3, kind: output, shape index: {}]  }
   0x1   :  { %v16_v0 = vld [vmem:[%s237_s1] sm:$0xff]  ;;  %v17_v1 = vld [vmem:[%s237_s1 + $0x8] sm:$0xff]  ;;  %v18_v2 = vld [vmem:[%s237_s1 + $0x10] sm:$0xff]  ;;  %144 = vmatprep.subr.bf16.mxu0 %v182_v3  ;;  %141 = vmatprep.mubr.msk.f32.mxu0 %vm183_vm0, %v184_v6 }
   0x2   :  { %v145_v4 = vpack.c.bf16 %v17_v1, %v16_v0  ;;  %v19_v5 = vld [vmem:[%s237_s1 + $0x18] sm:$0xff] }
   0x3   :  { %8 = vsyncpa [#allocation3], 0  ;;  %v148_v7 = vpack.c.bf16 %v19_v5, %v18_v2  ;;  %v15_v8 = vld [vmem:[%s236_s0] sm:$0xff]  ;;  %vm27_vm1 = vcmask 261120   ;;  %s185_s0 = smov [#allocation2]  }
   0x4   :  { %146 = vmatpush3.bf16.msra.mxu0 %v145_v4  ;;  %v126_v9 = vld [vmem:[%s238_s2] ss:$0 sm:$0xff]  ;;  %s118_s1 = sshll.u32 %s185_s0, 4  ;;  %s119_s1 = int_to_ptr.vmem [resolvable:$true] %s118_s1 }
   0x5   :  { %147 = vmatprep.subr.bf16.mxu0 %v182_v3  ;;  %s158_s2 = scalar_lea.vmem %s119_s1, 128  ;;  %p163_p1 = scmp.lt.s32.totalorder %s119_s1, %s119_s1 }
   0x6   :  { %p159_p0 = scmp.ne.s32.totalorder %s119_s1, %s158_s2  ;;  %p164_p2 = scmp.lt.s32.totalorder %s158_s2, %s158_s2 }
   0x8   :  { %149 = vmatpush3.bf16.msra.mxu0 %v148_v7  ;;  %p165_p3 = por %p164_p2, %p163_p1 }
   0xa   :  { %p166_p4 = pnand %p165_p3, %p159_p0 }
   0xb   :  { %142 = vmatmul.mubr.msk.f32.vlgmr.msra.gmra.mrb[0].mxu0 %vm27_vm1, %v15_v8 }
  0xde   :  { %v97_v10 = vpop.f32.mrb[0].mxu0 }
  0xdf   :  { %v98_v11 = vadd.f32 %v126_v9, %v97_v10  ;;  %v143_v12 = vpop.f32.mrb[1].mxu0 }
  0xe1   :  { %101 = vmax.xlane.f32.xlu0 %v98_v11 }
 0x16e   :  { %v102_v13 = vpop.xlane.xlu0 %101 }
 0x16f   :  { %v103_v14 = vsub.f32 %v98_v11, %v102_v13 }
 0x171   :  { %v104_v15 = vmul.f32 1.442695, %v103_v14 }
 0x173   :  { %154 = vpow2.f32 %v104_v15 }
 0x17d   :  { %v155_v16 = vpop.eup %154 }
 0x17e   :  { %106 = vadd.xlane.f32.xlu0 %v155_v16 }
 0x20b   :  { %v107_v17 = vpop.xlane.xlu0 %106 }
 0x20c   :  { %156 = vlog2.f32 %v107_v17 }
 0x216   :  { %v157_v18 = vpop.eup %156 }
 0x217   :  { %v109_v19 = vmul.f32 0.6931472, %v157_v18 }
 0x219   :  { %v110_v20 = vsub.f32 %v103_v14, %v109_v19 }
 0x21b   :  { %111 = vst [vmem:[#allocation2] sm:$0xff] %v110_v20 }
 0x21c   :  { %169 = shalt.err (!%p166_p4)
}
 0x21d   :  { %s170_s26 = scalar_lea.hbm %s239_s3, 128 }
 0x21e   :  { %p171_p5 = scmp.ne.s32.totalorder %s239_s3, %s170_s26  ;;  %p174_p6 = scmp.lt.u32.totalorder %s170_s26, %s239_s3 }
 0x220   :  { %p176_p7 = pnand %p174_p6, %p171_p5 }
 0x222   :  { %179 = shalt.err (!%p176_p7)
}
 0x223   :  { %121 = dma.vmem_to_hbm [thread:$0]  %s119_s1, 128, %s239_s3, [#allocation3]  }
 0x224   :  { %180 = dma.done.wait [#allocation3], 128  }
 0x225   :  { %181 = vsyncadd [#allocation3], 4294967168 }
 0x226   :  { %125 = vsyncpa [#allocation3], 1 }

</bundles_post_ra>
